<compile_context>
chip_gen: v5e
topology: v5e:2x2
jax: 0.10.0
libtpu: 0.0.40
codegen_flags: <defaults>
</compile_context>

<pallas_src>
import functools

import jax
import jax.numpy as jnp
from jax.experimental import pallas as pl
from jax.experimental.pallas import tpu as pltpu


def _kd_kernel(s_ref, t_ref, out_ref,
               ms_ref, mt_ref, ss_ref, st_ref, dot_ref,
               *, num_classes, block_classes, mask_cols):
    """Online (streaming over class tiles) KL(student || teacher) per row."""
    j = pl.program_id(1)

    @pl.when(j == 0)
    def _init():
        ms_ref[...] = jnp.full_like(ms_ref, -jnp.inf)
        mt_ref[...] = jnp.full_like(mt_ref, -jnp.inf)
        ss_ref[...] = jnp.zeros_like(ss_ref)
        st_ref[...] = jnp.zeros_like(st_ref)
        dot_ref[...] = jnp.zeros_like(dot_ref)

    s_raw = s_ref[...]
    t_raw = t_ref[...]
    if mask_cols:
        # Last class tile may extend past C: neutralize garbage columns.
        col = jax.lax.broadcasted_iota(jnp.int32, s_raw.shape, 1)
        valid = col < (num_classes - j * block_classes)
        neg = jnp.asarray(-1e30, dtype=s_raw.dtype)
        s_raw = jnp.where(valid, s_raw, neg)   # exp -> 0, (s - t) -> 0
        t_raw = jnp.where(valid, t_raw, neg)

    # Row maxes in native dtype (exact), upcast only the (TB,1) results.
    lms = jnp.max(s_raw, axis=-1, keepdims=True).astype(jnp.float32)
    lmt = jnp.max(t_raw, axis=-1, keepdims=True).astype(jnp.float32)
    ms_new = jnp.maximum(ms_ref[...], lms)
    mt_new = jnp.maximum(mt_ref[...], lmt)
    alpha = jnp.exp(ms_ref[...] - ms_new)   # 0 on the first class tile
    beta = jnp.exp(mt_ref[...] - mt_new)

    s = s_raw.astype(jnp.float32)
    t = t_raw.astype(jnp.float32)
    p = jnp.exp(s - ms_new)                 # unnormalized student probs
    q = jnp.exp(t - mt_new)                 # unnormalized teacher probs

    ss_ref[...] = alpha * ss_ref[...] + jnp.sum(p, axis=-1, keepdims=True)
    st_ref[...] = beta * st_ref[...] + jnp.sum(q, axis=-1, keepdims=True)
    dot_ref[...] = alpha * dot_ref[...] + jnp.sum(p * (s - t), axis=-1,
                                                  keepdims=True)
    ms_ref[...] = ms_new
    mt_ref[...] = mt_new

    @pl.when(j == pl.num_programs(1) - 1)
    def _finalize():
        # KL_row = dot/S - (M_s + log S) + (M_t + log T)
        S = ss_ref[...]
        T = st_ref[...]
        kl = (dot_ref[...] * pl.reciprocal(S, approx=True)
              - jnp.log(S) - ms_ref[...]
              + jnp.log(T) + mt_ref[...])
        out_ref[...] = kl                   # (TB, 1); partial rows clipped


def _round_up(x, m):
    return ((x + m - 1) // m) * m


def _vmem_capacity_bytes():
    try:
        info = pltpu.get_tpu_info()
        for attr in ("vmem_capacity_bytes", "vmem_bytes", "vmem_size_bytes"):
            v = getattr(info, attr, None)
            if v:
                return int(v)
    except Exception:
        pass
    return 64 * 1024 * 1024  # conservative: v7x per-TensorCore VMEM


def _choose_blocks(batch, num_classes, itemsize, budget):
    """Pick (block_batch, block_classes) so double-buffered inputs plus the
    f32 working set stay within `budget` bytes of VMEM."""
    sublane = 16 if itemsize < 4 else 8
    # 2 inputs x 2 pipeline buffers at input width + ~4 full-tile f32 temps.
    per_elem = 2 * 2 * itemsize + 4 * 4
    b_pad = _round_up(batch, sublane)
    # Prefer >= 2 batch tiles so the "parallel" batch axis can shard across
    # v7x's two TensorCores (no cost on v5e/v6e).
    half_b = _round_up(-(-b_pad // 2), sublane) if b_pad > sublane else b_pad

    rows_fit = budget // max(per_elem * num_classes, 1)
    if rows_fit >= sublane:
        # Full class dim in one block.
        tb = min(int(rows_fit), 2048, b_pad, half_b)
        tb = max(sublane, (tb // sublane) * sublane)
        return tb, num_classes

    # Very large class dim: tile classes too (online accumulation).
    tb = max(sublane, (min(half_b, 128) // sublane) * sublane)
    tc_fit = budget // max(per_elem * tb, 1)
    tc = max(128, (int(tc_fit) // 128) * 128)
    tc = min(tc, _round_up(num_classes, 128))
    if tc >= num_classes:
        tc = num_classes
    return tb, tc


def kd_loss(student_logit, teacher_logit, temperature=4.0,
            block_batch=None, block_classes=None):
    """Pallas TPU knowledge-distillation loss (batchmean KL(student||teacher)).

    `temperature` is unused, matching the reference forward.
    """
    del temperature
    assert student_logit.shape == teacher_logit.shape
    assert student_logit.ndim == 2, "expected (batch, num_classes)"
    B, C = student_logit.shape
    itemsize = max(jnp.dtype(student_logit.dtype).itemsize,
                   jnp.dtype(teacher_logit.dtype).itemsize)

    vmem_cap = _vmem_capacity_bytes()
    tiling_budget = int(vmem_cap * 0.55)     # what the tile-size picker may use
    vmem_limit = int(vmem_cap * 0.75)        # explicit scoped-VMEM limit

    tb, tc = _choose_blocks(B, C, itemsize, tiling_budget)
    if block_batch is not None:
        tb = int(block_batch)
    if block_classes is not None:
        tc = int(block_classes)
    if tc >= C:
        tc = C                               # full-extent class block
    mask_cols = (C % tc) != 0                # partial last class tile

    grid = (pl.cdiv(B, tb), pl.cdiv(C, tc))

    in_bytes = (student_logit.size * jnp.dtype(student_logit.dtype).itemsize
                + teacher_logit.size * jnp.dtype(teacher_logit.dtype).itemsize)

    kernel = functools.partial(_kd_kernel, num_classes=C, block_classes=tc,
                               mask_cols=mask_cols)

    row_kl = pl.pallas_call(
        kernel,
        out_shape=jax.ShapeDtypeStruct((B, 1), jnp.float32),
        grid_spec=pltpu.PrefetchScalarGridSpec(
            num_scalar_prefetch=0,
            grid=grid,
            in_specs=[
                pl.BlockSpec((tb, tc), lambda i, j: (i, j)),
                pl.BlockSpec((tb, tc), lambda i, j: (i, j)),
            ],
            out_specs=pl.BlockSpec((tb, 1), lambda i, j: (i, 0)),
            scratch_shapes=[
                pltpu.VMEM((tb, 1), jnp.float32),   # running student max
                pltpu.VMEM((tb, 1), jnp.float32),   # running teacher max
                pltpu.VMEM((tb, 1), jnp.float32),   # running sum exp(student)
                pltpu.VMEM((tb, 1), jnp.float32),   # running sum exp(teacher)
                pltpu.VMEM((tb, 1), jnp.float32),   # running dot term
            ]),
        compiler_params=pltpu.CompilerParams(
            dimension_semantics=("parallel", "arbitrary"),
            vmem_limit_bytes=vmem_limit),
        cost_estimate=pl.CostEstimate(
            flops=int(11 * B * C),
            transcendentals=int(2 * B * C),
            bytes_accessed=int(in_bytes + B * 4)),
    )(student_logit, teacher_logit)

    # Tiny final reduction (batchmean) in plain JAX.
    return jnp.sum(row_kl) / B


def _kd_loss_ref(student_logit, teacher_logit):
    s = student_logit.astype(jnp.float32)
    t = teacher_logit.astype(jnp.float32)
    s_prob = jax.nn.softmax(s, axis=-1)
    s_logp = jax.nn.log_softmax(s, axis=-1)
    t_logp = jax.nn.log_softmax(t, axis=-1)
    return jnp.sum(s_prob * (s_logp - t_logp)) / s.shape[0]


if __name__ == "__main__":
    key = jax.random.PRNGKey(0)
    k1, k2, k3, k4, k5, k6 = jax.random.split(key, 6)

    # Test 1: small f32 case (single block, full class dim).
    student = jax.random.normal(k1, (8, 128), dtype=jnp.float32)
    teacher = jax.random.normal(k2, (8, 128), dtype=jnp.float32)
    loss = jax.jit(kd_loss)(student, teacher)
    jax.block_until_ready(loss)
    ref = _kd_loss_ref(student, teacher)
    assert jnp.allclose(loss, ref, atol=2e-3, rtol=2e-3), (loss, ref)

    # Test 2: bf16 inputs, multi-step batch grid (exercises auto-pipelining
    # and the >=2-tile batch split).
    student2 = jax.random.normal(k3, (48, 512), dtype=jnp.bfloat16)
    teacher2 = jax.random.normal(k4, (48, 512), dtype=jnp.bfloat16)
    loss2 = jax.jit(functools.partial(kd_loss, block_batch=16))(student2, teacher2)
    jax.block_until_ready(loss2)
    ref2 = _kd_loss_ref(student2, teacher2)
    assert jnp.allclose(loss2, ref2, atol=5e-3, rtol=5e-3), (loss2, ref2)

    # Test 3: class-tiled online path with a partial last class tile
    # (320 % 128 != 0 -> in-kernel column masking) and a partial batch tile.
    student3 = jax.random.normal(k5, (24, 320), dtype=jnp.bfloat16)
    teacher3 = jax.random.normal(k6, (24, 320), dtype=jnp.bfloat16)
    loss3 = jax.jit(functools.partial(kd_loss, block_batch=16,
                                      block_classes=128))(student3, teacher3)
    jax.block_until_ready(loss3)
    ref3 = _kd_loss_ref(student3, teacher3)
    assert jnp.allclose(loss3, ref3, atol=5e-3, rtol=5e-3), (loss3, ref3)

    print("KERNEL_OK")
</pallas_src>

<mosaic_0001>
module attributes {stable_mosaic.version = 11 : i64} {
  func.func @_kd_kernel(%arg0: i32, %arg1: i32, %arg2: memref<8x128xf32, #tpu.memory_space<vmem>>, %arg3: memref<8x128xf32, #tpu.memory_space<vmem>>, %arg4: memref<8x1xf32, #tpu.memory_space<vmem>>, %arg5: memref<8x1xf32, #tpu.memory_space<vmem>>, %arg6: memref<8x1xf32, #tpu.memory_space<vmem>>, %arg7: memref<8x1xf32, #tpu.memory_space<vmem>>, %arg8: memref<8x1xf32, #tpu.memory_space<vmem>>, %arg9: memref<8x1xf32, #tpu.memory_space<vmem>>) attributes {dimension_semantics = [#tpu.dimension_semantics<parallel>, #tpu.dimension_semantics<arbitrary>], iteration_bounds = array<i64: 1, 1>, scalar_prefetch = 0 : i64, scratch_operands = 5 : i64, tpu.core_type = #tpu.core_type<tc>, window_params = [{transform_indices = @transform_0, window_bounds = array<i64: 8, 128>}, {transform_indices = @transform_1, window_bounds = array<i64: 8, 128>}, {transform_indices = @transform_2, window_bounds = array<i64: 8, 1>}]} {
    %c0_i32 = arith.constant 0 : i32
    %0 = arith.cmpi eq, %arg1, %c0_i32 : i32
    %1 = arith.extui %0 : i1 to i32
    %c0_i32_0 = arith.constant 0 : i32
    %2 = arith.cmpi ne, %1, %c0_i32_0 : i32
    scf.if %2 {
      %cst_34 = arith.constant 0xFF800000 : f32
      %50 = vector.broadcast %cst_34 : f32 to vector<8x1xf32>
      %c0_35 = arith.constant 0 : index
      %c0_36 = arith.constant 0 : index
      %51 = vector.load %arg5[%c0_35, %c0_36] : memref<8x1xf32, #tpu.memory_space<vmem>>, vector<8x1xf32>
      tpu.vector_store %arg5[%c0_35, %c0_36], %50 {strides = array<i32>} : memref<8x1xf32, #tpu.memory_space<vmem>>, vector<8x1xf32>,
      %cst_37 = arith.constant 0xFF800000 : f32
      %52 = vector.broadcast %cst_37 : f32 to vector<8x1xf32>
      %c0_38 = arith.constant 0 : index
      %c0_39 = arith.constant 0 : index
      %53 = vector.load %arg6[%c0_38, %c0_39] : memref<8x1xf32, #tpu.memory_space<vmem>>, vector<8x1xf32>
      tpu.vector_store %arg6[%c0_38, %c0_39], %52 {strides = array<i32>} : memref<8x1xf32, #tpu.memory_space<vmem>>, vector<8x1xf32>,
      %cst_40 = arith.constant 0.000000e+00 : f32
      %54 = vector.broadcast %cst_40 : f32 to vector<8x1xf32>
      %c0_41 = arith.constant 0 : index
      %c0_42 = arith.constant 0 : index
      %55 = vector.load %arg7[%c0_41, %c0_42] : memref<8x1xf32, #tpu.memory_space<vmem>>, vector<8x1xf32>
      tpu.vector_store %arg7[%c0_41, %c0_42], %54 {strides = array<i32>} : memref<8x1xf32, #tpu.memory_space<vmem>>, vector<8x1xf32>,
      %cst_43 = arith.constant 0.000000e+00 : f32
      %56 = vector.broadcast %cst_43 : f32 to vector<8x1xf32>
      %c0_44 = arith.constant 0 : index
      %c0_45 = arith.constant 0 : index
      %57 = vector.load %arg8[%c0_44, %c0_45] : memref<8x1xf32, #tpu.memory_space<vmem>>, vector<8x1xf32>
      tpu.vector_store %arg8[%c0_44, %c0_45], %56 {strides = array<i32>} : memref<8x1xf32, #tpu.memory_space<vmem>>, vector<8x1xf32>,
      %cst_46 = arith.constant 0.000000e+00 : f32
      %58 = vector.broadcast %cst_46 : f32 to vector<8x1xf32>
      %c0_47 = arith.constant 0 : index
      %c0_48 = arith.constant 0 : index
      %59 = vector.load %arg9[%c0_47, %c0_48] : memref<8x1xf32, #tpu.memory_space<vmem>>, vector<8x1xf32>
      tpu.vector_store %arg9[%c0_47, %c0_48], %58 {strides = array<i32>} : memref<8x1xf32, #tpu.memory_space<vmem>>, vector<8x1xf32>,
    } else {
    }
    %c0 = arith.constant 0 : index
    %c0_1 = arith.constant 0 : index
    %3 = vector.load %arg2[%c0, %c0_1] : memref<8x128xf32, #tpu.memory_space<vmem>>, vector<8x128xf32>
    %c0_2 = arith.constant 0 : index
    %c0_3 = arith.constant 0 : index
    %4 = vector.load %arg3[%c0_2, %c0_3] : memref<8x128xf32, #tpu.memory_space<vmem>>, vector<8x128xf32>
    %cst = arith.constant dense<0xFF800000> : vector<8xf32>
    %5 = vector.multi_reduction <maximumf>, %3, %cst [1] : vector<8x128xf32> to vector<8xf32>
    %6 = vector.shape_cast %5 : vector<8xf32> to vector<8x1xf32>
    %cst_4 = arith.constant dense<0xFF800000> : vector<8xf32>
    %7 = vector.multi_reduction <maximumf>, %4, %cst_4 [1] : vector<8x128xf32> to vector<8xf32>
    %8 = vector.shape_cast %7 : vector<8xf32> to vector<8x1xf32>
    %c0_5 = arith.constant 0 : index
    %c0_6 = arith.constant 0 : index
    %9 = vector.load %arg5[%c0_5, %c0_6] : memref<8x1xf32, #tpu.memory_space<vmem>>, vector<8x1xf32>
    %10 = arith.maximumf %9, %6 : vector<8x1xf32>
    %c0_7 = arith.constant 0 : index
    %c0_8 = arith.constant 0 : index
    %11 = vector.load %arg6[%c0_7, %c0_8] : memref<8x1xf32, #tpu.memory_space<vmem>>, vector<8x1xf32>
    %12 = arith.maximumf %11, %8 : vector<8x1xf32>
    %c0_9 = arith.constant 0 : index
    %c0_10 = arith.constant 0 : index
    %13 = vector.load %arg5[%c0_9, %c0_10] : memref<8x1xf32, #tpu.memory_space<vmem>>, vector<8x1xf32>
    %14 = arith.subf %13, %10 : vector<8x1xf32>
    %15 = math.exp %14 : vector<8x1xf32>
    %c0_11 = arith.constant 0 : index
    %c0_12 = arith.constant 0 : index
    %16 = vector.load %arg6[%c0_11, %c0_12] : memref<8x1xf32, #tpu.memory_space<vmem>>, vector<8x1xf32>
    %17 = arith.subf %16, %12 : vector<8x1xf32>
    %18 = math.exp %17 : vector<8x1xf32>
    %19 = vector.broadcast %10 : vector<8x1xf32> to vector<8x128xf32>
    %20 = arith.subf %3, %19 : vector<8x128xf32>
    %21 = math.exp %20 : vector<8x128xf32>
    %22 = vector.broadcast %12 : vector<8x1xf32> to vector<8x128xf32>
    %23 = arith.subf %4, %22 : vector<8x128xf32>
    %24 = math.exp %23 : vector<8x128xf32>
    %c0_13 = arith.constant 0 : index
    %c0_14 = arith.constant 0 : index
    %25 = vector.load %arg7[%c0_13, %c0_14] : memref<8x1xf32, #tpu.memory_space<vmem>>, vector<8x1xf32>
    %26 = arith.mulf %15, %25 : vector<8x1xf32>
    %cst_15 = arith.constant dense<0.000000e+00> : vector<8xf32>
    %27 = vector.multi_reduction <add>, %21, %cst_15 [1] : vector<8x128xf32> to vector<8xf32>
    %28 = vector.shape_cast %27 : vector<8xf32> to vector<8x1xf32>
    %29 = arith.addf %26, %28 : vector<8x1xf32>
    %c0_16 = arith.constant 0 : index
    %c0_17 = arith.constant 0 : index
    %30 = vector.load %arg7[%c0_16, %c0_17] : memref<8x1xf32, #tpu.memory_space<vmem>>, vector<8x1xf32>
    tpu.vector_store %arg7[%c0_16, %c0_17], %29 {strides = array<i32>} : memref<8x1xf32, #tpu.memory_space<vmem>>, vector<8x1xf32>,
    %c0_18 = arith.constant 0 : index
    %c0_19 = arith.constant 0 : index
    %31 = vector.load %arg8[%c0_18, %c0_19] : memref<8x1xf32, #tpu.memory_space<vmem>>, vector<8x1xf32>
    %32 = arith.mulf %18, %31 : vector<8x1xf32>
    %cst_20 = arith.constant dense<0.000000e+00> : vector<8xf32>
    %33 = vector.multi_reduction <add>, %24, %cst_20 [1] : vector<8x128xf32> to vector<8xf32>
    %34 = vector.shape_cast %33 : vector<8xf32> to vector<8x1xf32>
    %35 = arith.addf %32, %34 : vector<8x1xf32>
    %c0_21 = arith.constant 0 : index
    %c0_22 = arith.constant 0 : index
    %36 = vector.load %arg8[%c0_21, %c0_22] : memref<8x1xf32, #tpu.memory_space<vmem>>, vector<8x1xf32>
    tpu.vector_store %arg8[%c0_21, %c0_22], %35 {strides = array<i32>} : memref<8x1xf32, #tpu.memory_space<vmem>>, vector<8x1xf32>,
    %c0_23 = arith.constant 0 : index
    %c0_24 = arith.constant 0 : index
    %37 = vector.load %arg9[%c0_23, %c0_24] : memref<8x1xf32, #tpu.memory_space<vmem>>, vector<8x1xf32>
    %38 = arith.mulf %15, %37 : vector<8x1xf32>
    %39 = arith.subf %3, %4 : vector<8x128xf32>
    %40 = arith.mulf %21, %39 : vector<8x128xf32>
    %cst_25 = arith.constant dense<0.000000e+00> : vector<8xf32>
    %41 = vector.multi_reduction <add>, %40, %cst_25 [1] : vector<8x128xf32> to vector<8xf32>
    %42 = vector.shape_cast %41 : vector<8xf32> to vector<8x1xf32>
    %43 = arith.addf %38, %42 : vector<8x1xf32>
    %c0_26 = arith.constant 0 : index
    %c0_27 = arith.constant 0 : index
    %44 = vector.load %arg9[%c0_26, %c0_27] : memref<8x1xf32, #tpu.memory_space<vmem>>, vector<8x1xf32>
    tpu.vector_store %arg9[%c0_26, %c0_27], %43 {strides = array<i32>} : memref<8x1xf32, #tpu.memory_space<vmem>>, vector<8x1xf32>,
    %c0_28 = arith.constant 0 : index
    %c0_29 = arith.constant 0 : index
    %45 = vector.load %arg5[%c0_28, %c0_29] : memref<8x1xf32, #tpu.memory_space<vmem>>, vector<8x1xf32>
    tpu.vector_store %arg5[%c0_28, %c0_29], %10 {strides = array<i32>} : memref<8x1xf32, #tpu.memory_space<vmem>>, vector<8x1xf32>,
    %c0_30 = arith.constant 0 : index
    %c0_31 = arith.constant 0 : index
    %46 = vector.load %arg6[%c0_30, %c0_31] : memref<8x1xf32, #tpu.memory_space<vmem>>, vector<8x1xf32>
    tpu.vector_store %arg6[%c0_30, %c0_31], %12 {strides = array<i32>} : memref<8x1xf32, #tpu.memory_space<vmem>>, vector<8x1xf32>,
    %c0_i32_32 = arith.constant 0 : i32
    %47 = arith.cmpi eq, %arg1, %c0_i32_32 : i32
    %48 = arith.extui %47 : i1 to i32
    %c0_i32_33 = arith.constant 0 : i32
    %49 = arith.cmpi ne, %48, %c0_i32_33 : i32
    scf.if %49 {
      %c0_34 = arith.constant 0 : index
      %c0_35 = arith.constant 0 : index
      %50 = vector.load %arg7[%c0_34, %c0_35] : memref<8x1xf32, #tpu.memory_space<vmem>>, vector<8x1xf32>
      %c0_36 = arith.constant 0 : index
      %c0_37 = arith.constant 0 : index
      %51 = vector.load %arg8[%c0_36, %c0_37] : memref<8x1xf32, #tpu.memory_space<vmem>>, vector<8x1xf32>
      %c0_38 = arith.constant 0 : index
      %c0_39 = arith.constant 0 : index
      %52 = vector.load %arg9[%c0_38, %c0_39] : memref<8x1xf32, #tpu.memory_space<vmem>>, vector<8x1xf32>
      %53 = tpu.reciprocal %50 {approx = true} : vector<8x1xf32> -> vector<8x1xf32>
      %54 = arith.mulf %52, %53 : vector<8x1xf32>
      %55 = math.log %50 : vector<8x1xf32>
      %56 = arith.subf %54, %55 : vector<8x1xf32>
      %c0_40 = arith.constant 0 : index
      %c0_41 = arith.constant 0 : index
      %57 = vector.load %arg5[%c0_40, %c0_41] : memref<8x1xf32, #tpu.memory_space<vmem>>, vector<8x1xf32>
      %58 = arith.subf %56, %57 : vector<8x1xf32>
      %59 = math.log %51 : vector<8x1xf32>
      %60 = arith.addf %58, %59 : vector<8x1xf32>
      %c0_42 = arith.constant 0 : index
      %c0_43 = arith.constant 0 : index
      %61 = vector.load %arg6[%c0_42, %c0_43] : memref<8x1xf32, #tpu.memory_space<vmem>>, vector<8x1xf32>
      %62 = arith.addf %60, %61 : vector<8x1xf32>
      %c0_44 = arith.constant 0 : index
      %c0_45 = arith.constant 0 : index
      %63 = vector.load %arg4[%c0_44, %c0_45] : memref<8x1xf32, #tpu.memory_space<vmem>>, vector<8x1xf32>
      tpu.vector_store %arg4[%c0_44, %c0_45], %62 {strides = array<i32>} : memref<8x1xf32, #tpu.memory_space<vmem>>, vector<8x1xf32>,
    } else {
    }
    return
  }
  func.func @transform_0(%arg0: i32, %arg1: i32) -> (i32, i32) {
    %c0_i32 = arith.constant 0 : i32
    return %arg0, %arg1 : i32, i32
  }
  func.func @transform_1(%arg0: i32, %arg1: i32) -> (i32, i32) {
    %c0_i32 = arith.constant 0 : i32
    return %arg0, %arg1 : i32, i32
  }
  func.func @transform_2(%arg0: i32, %arg1: i32) -> (i32, i32) {
    %c0_i32 = arith.constant 0 : i32
    %c0_i32_0 = arith.constant 0 : i32
    return %arg0, %c0_i32 : i32, i32
  }
}

</mosaic_0001>

<bundles_post_ra>
// kernel: kd_loss.1
= control target key start
LH: loop header
LB: loop body
LE: loop exit
PB: predicated region body
PF: predicated region fallthrough
CT: control target
= control target key end

     0   :  { %7 = vsyncpa [#allocation8], 0  ;;  %s242_s0 = inlined_call_operand.hbm [shape: f32[8,128], index: 0, kind: input, shape index: {}]   ;;  %s243_s1 = inlined_call_operand.hbm [shape: f32[8,128], index: 1, kind: input, shape index: {}]   ;;  %s244_s2 = inlined_call_operand.vmem [shape: f32[8,1], index: 2, kind: output, shape index: {}]  }
   0x1   :  { %s14_s11 = sshll.u32 %s242_s0, 4  ;;  %s15_s11 = int_to_ptr.hbm [resolvable:$true] %s14_s11 }
   0x2   :  { %8 = vsyncpa [#allocation10], 0  ;;  %s202_s12 = smov [#allocation7]   ;;  %s25_s16 = sshll.u32 %s243_s1, 4  ;;  %s26_s16 = int_to_ptr.hbm [resolvable:$true] %s25_s16 }
   0x3   :  { %s16_s13 = sshll.u32 %s202_s12, 4  ;;  %s203_s17 = smov [#allocation9]   ;;  %s17_s13 = int_to_ptr.vmem [resolvable:$true] %s16_s13 }
   0x4   :  { %19 = dma.hbm_to_vmem [thread:$0]  %s15_s11, 128, %s17_s13, [#allocation8]  }
   0x5   :  { %s27_s18 = sshll.u32 %s203_s17, 4  ;;  %s28_s18 = int_to_ptr.vmem [resolvable:$true] %s27_s18 }
   0x6   :  { %30 = dma.hbm_to_vmem [thread:$0]  %s26_s16, 128, %s28_s18, [#allocation10]  }
   0x7   :  { %198 = dma.done.wait [#allocation8], 128  }
   0x8   :  { %199 = vsyncadd [#allocation8], 4294967168 }
   0x9   :  { %200 = dma.done.wait [#allocation10], 128  }
   0xa   :  { %201 = vsyncadd [#allocation10], 4294967168  ;;  %vm43_vm0 = vcmask 7168   ;;  %v204_v0 = vmov -inf   ;;  %v49_v1 = vld [vmem:[#allocation7] sm:$0xff]  ;;  %v50_v2 = vld [vmem:[#allocation9] sm:$0xff] }
   0xb   :  { %44 = vst.msk [vmem:[#allocation2] sm:$0xff] %vm43_vm0, %v204_v0  ;;  %51 = vmax.xlane.f32.xlu0 %v49_v1  ;;  %v205_v3 = vmov 0   ;;  %v206_v4 = vmov 0.0   ;;  %v96_v17 = vsub.f32 %v49_v1, %v50_v2 }
   0xc   :  { %45 = vst.msk [vmem:[#allocation3] sm:$0xff] %vm43_vm0, %v204_v0  ;;  %134 = vset.pattern.permute.xlu1 %v205_v3  ;;  %135 = vset.pattern.permute.xlu0 %v205_v3 }
   0xd   :  { %46 = vst.msk [vmem:[#allocation4] sm:$0xff] %vm43_vm0, %v206_v4 }
   0xe   :  { %47 = vst.msk [vmem:[#allocation5] sm:$0xff] %vm43_vm0, %v206_v4 }
   0xf   :  { %48 = vst.msk [vmem:[#allocation6] sm:$0xff] %vm43_vm0, %v206_v4 }
  0x12   :  { %v55_v5 = vld [vmem:[#allocation2] sm:$0xff] }
  0x13   :  { %53 = vmax.xlane.f32.xlu0 %v50_v2  ;;  %v57_v9 = vld [vmem:[#allocation3] sm:$0xff] }
  0x14   :  { %v81_v26 = vld [vmem:[#allocation4] sm:$0xff] }
  0x15   :  { %v88_v35 = vld [vmem:[#allocation5] sm:$0xff] }
  0x16   :  { %v94_v27 = vld [vmem:[#allocation6] sm:$0xff] }
  0x7e   :  { %v52_v6 = vpop.xlane.xlu0 %51 }
  0x7f   :  { %v56_v7 = vmax.f32 %v55_v5, %v52_v6 }
  0x81   :  { %v59_v8 = vsub.f32 %v55_v5, %v56_v7  ;;  %102 = vst.msk [vmem:[#allocation2] sm:$0xff] %vm43_vm0, %v56_v7  ;;  %67 = vperm.xlu1 %134, %v56_v7  }
  0x83   :  { %v60_v23 = vmul.f32 1.442695, %v59_v8 }
  0x86   :  { %v54_v10 = vpop.xlane.xlu0 %53 }
  0x87   :  { %v58_v11 = vmax.f32 %v57_v9, %v54_v10 }
  0x88   :  { %v115_v48 = vld [vmem:[#allocation2] sm:$0xff] }
  0x89   :  { %v62_v12 = vsub.f32 %v57_v9, %v58_v11  ;;  %103 = vst.msk [vmem:[#allocation3] sm:$0xff] %vm43_vm0, %v58_v11  ;;  %75 = vperm.xlu1 %134, %v58_v11  }
  0x8b   :  { %v63_v24 = vmul.f32 1.442695, %v62_v12 }
  0x90   :  { %v120_v52 = vld [vmem:[#allocation3] sm:$0xff] }
  0xf3   :  { %v68_v13 = vpop.permute.xlu1 %67 }
  0xf4   :  { %v70_v14 = vsub.f32 %v49_v1, %v68_v13 }
  0xf6   :  { %v71_v15 = vmul.f32 1.442695, %v70_v14 }
  0xf8   :  { %136 = vpow2.f32 %v71_v15 }
  0xfb   :  { %v76_v16 = vpop.permute.xlu1 %75 }
  0xfc   :  { %v78_v18 = vsub.f32 %v50_v2, %v76_v16 }
  0xfe   :  { %v137_v19 = vpop.eup %136  ;;  %v79_v20 = vmul.f32 1.442695, %v78_v18 }
  0xff   :  { %83 = vadd.xlane.f32.xlu2 %v137_v19  ;;  %v97_v21 = vmul.f32 %v137_v19, %v96_v17 }
 0x100   :  { %138 = vpow2.f32 %v79_v20 }
 0x101   :  { %98 = vadd.xlane.f32.xlu0 %v97_v21  ;;  %140 = vpow2.f32 %v60_v23 }
 0x102   :  { %142 = vpow2.f32 %v63_v24 }
 0x106   :  { %v139_v22 = vpop.eup %138 }
 0x107   :  { %90 = vadd.xlane.f32.xlu2 %v139_v22  ;;  %v141_v25 = vpop.eup %140 }
 0x108   :  { %v82_v28 = vmul.f32 %v141_v25, %v81_v26  ;;  %v95_v31 = vmul.f32 %v141_v25, %v94_v27  ;;  %v143_v34 = vpop.eup %142 }
 0x109   :  { %v89_v36 = vmul.f32 %v143_v34, %v88_v35 }
 0x172   :  { %v84_v29 = vpop.xlane.xlu2 %83 }
 0x173   :  { %v85_v30 = vadd.f32 %v84_v29, %v82_v28 }
 0x174   :  { %v99_v32 = vpop.xlane.xlu0 %98 }
 0x175   :  { %87 = vst.msk [vmem:[#allocation4] sm:$0xff] %vm43_vm0, %v85_v30  ;;  %v100_v33 = vadd.f32 %v99_v32, %v95_v31 }
 0x177   :  { %101 = vst.msk [vmem:[#allocation6] sm:$0xff] %vm43_vm0, %v100_v33 }
 0x17a   :  { %v91_v37 = vpop.xlane.xlu2 %90 }
 0x17b   :  { %v92_v38 = vadd.f32 %v91_v37, %v89_v36 }
 0x17c   :  { %v107_v39 = vld [vmem:[#allocation4] sm:$0xff] }
 0x17d   :  { %144 = vrcp.f32 %v107_v39  ;;  %93 = vst.msk [vmem:[#allocation5] sm:$0xff] %vm43_vm0, %v92_v38 }
 0x17e   :  { %146 = vlog2.f32 %v107_v39  ;;  %v109_v41 = vld [vmem:[#allocation6] sm:$0xff] }
 0x183   :  { %v145_v40 = vpop.eup %144 }
 0x184   :  { %v147_v42 = vpop.eup %146  ;;  %v111_v43 = vmul.f32 %v145_v40, %v109_v41  ;;  %v108_v44 = vld [vmem:[#allocation5] sm:$0xff] }
 0x185   :  { %v113_v45 = vmul.f32 0.6931472, %v147_v42  ;;  %148 = vlog2.f32 %v108_v44 }
 0x187   :  { %v114_v46 = vsub.f32 %v111_v43, %v113_v45 }
 0x189   :  { %v116_v49 = vsub.f32 %v114_v46, %v115_v48 }
 0x18b   :  { %v149_v47 = vpop.eup %148 }
 0x18c   :  { %v118_v50 = vmul.f32 0.6931472, %v149_v47 }
 0x18e   :  { %v119_v51 = vadd.f32 %v118_v50, %v116_v49 }
 0x190   :  { %v121_v53 = vadd.f32 %v120_v52, %v119_v51 }
 0x192   :  { %122 = vst.msk [vmem:[%s244_s2] sm:$0xff] %vm43_vm0, %v121_v53 }
 0x193   :  { %127 = vsyncpa [#allocation8], 1 }
 0x194   :  { %128 = vsyncpa [#allocation10], 1 }

</bundles_post_ra>
